<compile_context>
chip_gen: v5e
topology: v5e:2x2
jax: 0.10.0
libtpu: 0.0.40
codegen_flags: <defaults>
</compile_context>

<pallas_src>
import jax
import jax.numpy as jnp
from jax.experimental import pallas as pl
from jax.experimental.pallas import tpu as pltpu

_LANE = 128


def _round_up(x, m):
    return (x + m - 1) // m * m


def _tile_and_pad(dim, unit, max_tile):
    """Pick a tile (multiple of `unit`, <= max_tile) and pad `dim` to it.

    Prefers large tiles as long as the padding overhead stays small, so an
    awkward dim (e.g. 640) gets a wide tile with a few % of zero padding
    instead of collapsing to `unit`-wide panels."""
    dim_r = _round_up(max(dim, 1), unit)
    if dim_r <= max_tile:
        return dim_r, dim_r
    for t in range(max_tile, unit - 1, -unit):
        p = _round_up(dim_r, t)
        if p - dim_r <= max(dim_r // 8, unit):
            return t, p
    return unit, dim_r


def _vmem_capacity_bytes():
    """Generation-aware VMEM capacity with a v7x-safe (64 MiB) fallback."""
    try:
        cap = int(getattr(pltpu.get_tpu_info(), "vmem_capacity_bytes", 0) or 0)
    except Exception:
        cap = 0
    if cap < (16 << 20):
        cap = 64 << 20
    return cap


def lstm_cell_kernel(x_ref, h_ref, wx_ref, wh_ref, b_ref, cx_ref,
                     hy_ref, cy_ref):
    """One (H-tile, batch-tile) grid step; full-K contraction, no accumulator.

    x_ref : (tb, Dp)     input activations (weight dtype)
    h_ref : (tb, Hp)     previous hidden state (weight dtype)
    wx_ref: (4, Dp, tn)  gate-major, pre-transposed x->gates weights
    wh_ref: (4, Hp, tn)  gate-major, pre-transposed h->gates weights
    b_ref : (4, 1, tn)   folded bias (f32)
    cx_ref: (tb, tn)     previous cell state
    hy/cy : (tb, tn)     outputs
    """
    x = x_ref[...]
    h = h_ref[...]
    b = b_ref[...].astype(jnp.float32)   # (4, 1, tn)

    def gate(g):
        # Bias folded into the gate init; two full-K MXU dots, f32 accumulate.
        return (b[g]
                + jnp.dot(x, wx_ref[g], preferred_element_type=jnp.float32)
                + jnp.dot(h, wh_ref[g], preferred_element_type=jnp.float32))

    ingate = jax.nn.sigmoid(gate(0))
    forgetgate = jax.nn.sigmoid(gate(1))
    cellgate = jnp.tanh(gate(2))
    outgate = jax.nn.sigmoid(gate(3))

    cx = cx_ref[...].astype(jnp.float32)
    cy = cx * forgetgate + ingate * cellgate
    hy = outgate * jnp.tanh(cy)

    cy_ref[...] = cy.astype(cy_ref.dtype)
    hy_ref[...] = hy.astype(hy_ref.dtype)


def prepare_lstm_params(w_x2h, b_x2h, w_h2h, b_h2h,
                        matmul_dtype=jnp.bfloat16, tn_max=512):
    """One-time parameter prep (call at init, NOT per step).

    w_x2h: (4H, Din), b_x2h: (4H,), w_h2h: (4H, H), b_h2h: (4H,)
    (PyTorch nn.Linear convention; gate order [i, f, g, o] along the 4H axis.)

    Returns:
      wx: (4, Dp, Hp)  gate-major, pre-transposed, zero-padded, matmul_dtype.
      wh: (4, Hp, Hp)  same for the hidden projection.
      b : (4, 1, Hp)   folded (b_x2h + b_h2h), f32.
    Dp = round_up(Din, 128); Hp is padded to a multiple of a large
    lane-aligned tile (<= tn_max).
    """
    four_h, din = w_x2h.shape
    H = four_h // 4
    Dp = _round_up(din, _LANE)
    _, Hp = _tile_and_pad(H, _LANE, tn_max)

    wx = jnp.transpose(w_x2h.reshape(4, H, din), (0, 2, 1))   # (4, Din, H)
    wh = jnp.transpose(w_h2h.reshape(4, H, H), (0, 2, 1))     # (4, H,   H)
    wx = jnp.pad(wx, ((0, 0), (0, Dp - din), (0, Hp - H)))
    wh = jnp.pad(wh, ((0, 0), (0, Hp - H), (0, Hp - H)))
    if matmul_dtype is not None:
        wx = wx.astype(matmul_dtype)
        wh = wh.astype(matmul_dtype)

    b = (b_x2h + b_h2h).astype(jnp.float32).reshape(4, 1, H)
    b = jnp.pad(b, ((0, 0), (0, 0), (0, Hp - H)))
    return wx, wh, b


def lstm_cell(x, hx, cx, wx, wh, b, *, tb_max=256, tn_max=512):
    """Single LSTM-cell step.  Returns (hy, cy), each (B, hidden_size)."""
    B, din = x.shape
    H = hx.shape[-1]
    _, Dp, Hp = wx.shape
    wdtype = wx.dtype
    wsz = jnp.dtype(wdtype).itemsize
    osz = jnp.dtype(x.dtype).itemsize

    vmem_cap = _vmem_capacity_bytes()
    vmem_budget = int(0.8 * vmem_cap)

    # Batch tile: dtype-aware sublane unit (bf16 packs 16 rows per vreg).
    sub_unit = {4: 8, 2: 16, 1: 32}.get(wsz, 8)
    tb, Bp = _tile_and_pad(B, sub_unit, tb_max)

    # H tile: largest lane-aligned divisor of Hp whose double-buffered weight
    # panel fits in at most half the VMEM budget.
    tn_cands = [t for t in range(min(tn_max, Hp), _LANE - 1, -_LANE)
                if Hp % t == 0]
    tn = tn_cands[-1]
    for t in tn_cands:
        if 2 * 4 * (Dp + Hp) * t * wsz <= vmem_budget // 2:
            tn = t
            break

    # v7x (2 TensorCores): avoid a single-block grid when H allows >=2 tiles.
    if (Bp // tb) * (Hp // tn) == 1 and Hp >= 2 * _LANE:
        for t in range(((Hp // 2) // _LANE) * _LANE, _LANE - 1, -_LANE):
            if Hp % t == 0:
                tn = t
                break

    def working_set(tb_):
        per_step = (4 * Dp * tn * wsz + 4 * Hp * tn * wsz + 4 * tn * 4
                    + tb_ * Dp * wsz + tb_ * Hp * wsz   # x, hx blocks
                    + tb_ * tn * osz                    # cx block
                    + 2 * tb_ * tn * osz)               # hy, cy blocks
        return 2 * per_step                             # double buffering

    while working_set(tb) > vmem_budget and tb > sub_unit:
        tb = max(sub_unit, (tb // 2) // sub_unit * sub_unit)
        Bp = _round_up(B, tb)
    if working_set(tb) > vmem_budget:
        # TODO(synk): add a K-tiled reduction path for input_size + hidden_size
        # too large for a VMEM-resident weight panel.
        raise ValueError("LSTM weight panel does not fit VMEM; K tiling needed")

    vmem_limit = int(min(max(2 * working_set(tb) + (4 << 20), 32 << 20),
                         int(0.92 * vmem_cap)))

    # Per-step work: activation-sized pads/casts only (no-ops when aligned).
    xp = jnp.pad(x, ((0, Bp - B), (0, Dp - din))).astype(wdtype)
    hp = jnp.pad(hx, ((0, Bp - B), (0, Hp - H))).astype(wdtype)
    cp = jnp.pad(cx, ((0, Bp - B), (0, Hp - H)))

    # Batch axis innermost: weight block index depends only on j, so it stays
    # VMEM-resident across consecutive batch tiles (no re-fetch).
    grid = (Hp // tn, Bp // tb)

    grid_spec = pltpu.PrefetchScalarGridSpec(
        num_scalar_prefetch=0,
        grid=grid,
        in_specs=[
            pl.BlockSpec((tb, Dp), lambda j, i: (i, 0)),        # x
            pl.BlockSpec((tb, Hp), lambda j, i: (i, 0)),        # hx
            pl.BlockSpec((4, Dp, tn), lambda j, i: (0, 0, j)),  # wx
            pl.BlockSpec((4, Hp, tn), lambda j, i: (0, 0, j)),  # wh
            pl.BlockSpec((4, 1, tn), lambda j, i: (0, 0, j)),   # bias
            pl.BlockSpec((tb, tn), lambda j, i: (i, j)),        # cx
        ],
        out_specs=(
            pl.BlockSpec((tb, tn), lambda j, i: (i, j)),        # hy
            pl.BlockSpec((tb, tn), lambda j, i: (i, j)),        # cy
        ),
    )

    hy_p, cy_p = pl.pallas_call(
        lstm_cell_kernel,
        out_shape=(jax.ShapeDtypeStruct((Bp, Hp), x.dtype),
                   jax.ShapeDtypeStruct((Bp, Hp), x.dtype)),
        grid_spec=grid_spec,
        compiler_params=pltpu.CompilerParams(
            dimension_semantics=("parallel", "parallel"),
            vmem_limit_bytes=vmem_limit,
        ),
    )(xp, hp, wx, wh, b, cp)

    return hy_p[:B, :H], cy_p[:B, :H]


def lstm_cell_ref(x, hx, cx, w_x2h, b_x2h, w_h2h, b_h2h):
    gates = x @ w_x2h.T + b_x2h + hx @ w_h2h.T + b_h2h
    H = hx.shape[-1]
    i = jax.nn.sigmoid(gates[:, 0 * H:1 * H])
    f = jax.nn.sigmoid(gates[:, 1 * H:2 * H])
    g = jnp.tanh(gates[:, 2 * H:3 * H])
    o = jax.nn.sigmoid(gates[:, 3 * H:4 * H])
    cy = cx * f + i * g
    hy = o * jnp.tanh(cy)
    return hy, cy


if __name__ == "__main__":
    key = jax.random.PRNGKey(0)
    B, input_size, hidden_size = 8, 32, 32

    k = jax.random.split(key, 7)
    x = jax.random.normal(k[0], (B, input_size), dtype=jnp.float32)
    hx = jax.random.normal(k[1], (B, hidden_size), dtype=jnp.float32)
    cx = jax.random.normal(k[2], (B, hidden_size), dtype=jnp.float32)

    # Deterministic parameter init (shapes match nn.Linear in the module).
    bound_x = 1.0 / (input_size ** 0.5)
    bound_h = 1.0 / (hidden_size ** 0.5)
    w_x2h = jax.random.uniform(k[3], (4 * hidden_size, input_size),
                               minval=-bound_x, maxval=bound_x, dtype=jnp.float32)
    b_x2h = jax.random.uniform(k[4], (4 * hidden_size,),
                               minval=-bound_x, maxval=bound_x, dtype=jnp.float32)
    w_h2h = jax.random.uniform(k[5], (4 * hidden_size, hidden_size),
                               minval=-bound_h, maxval=bound_h, dtype=jnp.float32)
    b_h2h = jax.random.uniform(k[6], (4 * hidden_size,),
                               minval=-bound_h, maxval=bound_h, dtype=jnp.float32)

    hy_ref, cy_ref = lstm_cell_ref(x, hx, cx, w_x2h, b_x2h, w_h2h, b_h2h)
    step = jax.jit(lstm_cell)

    # Exact-precision path: f32 weights, tight tolerance.
    wx32, wh32, bf = prepare_lstm_params(w_x2h, b_x2h, w_h2h, b_h2h,
                                         matmul_dtype=jnp.float32)
    hy, cy = step(x, hx, cx, wx32, wh32, bf)
    jax.block_until_ready((hy, cy))
    assert jnp.allclose(hy, hy_ref, atol=1e-5, rtol=1e-5)
    assert jnp.allclose(cy, cy_ref, atol=1e-5, rtol=1e-5)

    # Default (performance) path: bf16 weights/activations, f32 accumulation;
    # compare against the f32 reference at bf16-appropriate tolerance.
    wx16, wh16, bf16b = prepare_lstm_params(w_x2h, b_x2h, w_h2h, b_h2h)
    hy16, cy16 = step(x, hx, cx, wx16, wh16, bf16b)
    jax.block_until_ready((hy16, cy16))
    assert jnp.allclose(hy16, hy_ref, atol=3e-2, rtol=3e-2)
    assert jnp.allclose(cy16, cy_ref, atol=3e-2, rtol=3e-2)

    print("KERNEL_OK")
</pallas_src>

<mosaic_0001>
module attributes {stable_mosaic.version = 11 : i64} {
  func.func @lstm_cell_kernel(%arg0: i32, %arg1: i32, %arg2: memref<8x128xf32, #tpu.memory_space<vmem>>, %arg3: memref<8x128xf32, #tpu.memory_space<vmem>>, %arg4: memref<4x128x128xf32, #tpu.memory_space<vmem>>, %arg5: memref<4x128x128xf32, #tpu.memory_space<vmem>>, %arg6: memref<4x1x128xf32, #tpu.memory_space<vmem>>, %arg7: memref<8x128xf32, #tpu.memory_space<vmem>>, %arg8: memref<8x128xf32, #tpu.memory_space<vmem>>, %arg9: memref<8x128xf32, #tpu.memory_space<vmem>>) attributes {dimension_semantics = [#tpu.dimension_semantics<parallel>, #tpu.dimension_semantics<parallel>], iteration_bounds = array<i64: 1, 1>, scalar_prefetch = 0 : i64, scratch_operands = 0 : i64, tpu.core_type = #tpu.core_type<tc>, window_params = [{transform_indices = @transform_0, window_bounds = array<i64: 8, 128>}, {transform_indices = @transform_1, window_bounds = array<i64: 8, 128>}, {transform_indices = @transform_2, window_bounds = array<i64: 4, 128, 128>}, {transform_indices = @transform_3, window_bounds = array<i64: 4, 128, 128>}, {transform_indices = @transform_4, window_bounds = array<i64: 4, 1, 128>}, {transform_indices = @transform_5, window_bounds = array<i64: 8, 128>}, {transform_indices = @transform_6, window_bounds = array<i64: 8, 128>}, {transform_indices = @transform_7, window_bounds = array<i64: 8, 128>}]} {
    %c0 = arith.constant 0 : index
    %c0_0 = arith.constant 0 : index
    %0 = vector.load %arg2[%c0, %c0_0] : memref<8x128xf32, #tpu.memory_space<vmem>>, vector<8x128xf32>
    %c0_1 = arith.constant 0 : index
    %c0_2 = arith.constant 0 : index
    %1 = vector.load %arg3[%c0_1, %c0_2] : memref<8x128xf32, #tpu.memory_space<vmem>>, vector<8x128xf32>
    %c0_3 = arith.constant 0 : index
    %c0_4 = arith.constant 0 : index
    %c0_5 = arith.constant 0 : index
    %2 = vector.load %arg6[%c0_3, %c0_4, %c0_5] : memref<4x1x128xf32, #tpu.memory_space<vmem>>, vector<4x1x128xf32>
    %3 = vector.extract_strided_slice %2 {offsets = [0, 0, 0], sizes = [1, 1, 128], strides = [1, 1, 1]} : vector<4x1x128xf32> to vector<1x1x128xf32>
    %4 = vector.shape_cast %3 : vector<1x1x128xf32> to vector<1x128xf32>
    %c0_6 = arith.constant 0 : index
    %c0_7 = arith.constant 0 : index
    %c0_8 = arith.constant 0 : index
    %5 = vector.load %arg4[%c0_6, %c0_7, %c0_8] : memref<4x128x128xf32, #tpu.memory_space<vmem>>, vector<1x128x128xf32>
    %6 = vector.shape_cast %5 : vector<1x128x128xf32> to vector<128x128xf32>
    %cst = arith.constant dense<0.000000e+00> : vector<8x128xf32>
    %7 = tpu.matmul %0, %6, %cst {dimension_numbers = #tpu.dot_dimension_numbers<[1], [0], [0], [1], [0, 0, 1, 1], [], []>} : vector<8x128xf32>, vector<128x128xf32>, vector<8x128xf32> -> vector<8x128xf32>
    %8 = vector.broadcast %4 : vector<1x128xf32> to vector<8x128xf32>
    %9 = arith.addf %8, %7 : vector<8x128xf32>
    %c0_9 = arith.constant 0 : index
    %c0_10 = arith.constant 0 : index
    %c0_11 = arith.constant 0 : index
    %10 = vector.load %arg5[%c0_9, %c0_10, %c0_11] : memref<4x128x128xf32, #tpu.memory_space<vmem>>, vector<1x128x128xf32>
    %11 = vector.shape_cast %10 : vector<1x128x128xf32> to vector<128x128xf32>
    %cst_12 = arith.constant dense<0.000000e+00> : vector<8x128xf32>
    %12 = tpu.matmul %1, %11, %cst_12 {dimension_numbers = #tpu.dot_dimension_numbers<[1], [0], [0], [1], [0, 0, 1, 1], [], []>} : vector<8x128xf32>, vector<128x128xf32>, vector<8x128xf32> -> vector<8x128xf32>
    %13 = arith.addf %9, %12 : vector<8x128xf32>
    %14 = arith.negf %13 : vector<8x128xf32>
    %15 = math.exp %14 : vector<8x128xf32>
    %cst_13 = arith.constant 1.000000e+00 : f32
    %16 = vector.broadcast %cst_13 : f32 to vector<8x128xf32>
    %17 = arith.addf %16, %15 : vector<8x128xf32>
    %18 = arith.divf %16, %17 : vector<8x128xf32>
    %19 = vector.extract_strided_slice %2 {offsets = [1, 0, 0], sizes = [1, 1, 128], strides = [1, 1, 1]} : vector<4x1x128xf32> to vector<1x1x128xf32>
    %20 = vector.shape_cast %19 : vector<1x1x128xf32> to vector<1x128xf32>
    %c1 = arith.constant 1 : index
    %c0_14 = arith.constant 0 : index
    %c0_15 = arith.constant 0 : index
    %21 = vector.load %arg4[%c1, %c0_14, %c0_15] : memref<4x128x128xf32, #tpu.memory_space<vmem>>, vector<1x128x128xf32>
    %22 = vector.shape_cast %21 : vector<1x128x128xf32> to vector<128x128xf32>
    %cst_16 = arith.constant dense<0.000000e+00> : vector<8x128xf32>
    %23 = tpu.matmul %0, %22, %cst_16 {dimension_numbers = #tpu.dot_dimension_numbers<[1], [0], [0], [1], [0, 0, 1, 1], [], []>} : vector<8x128xf32>, vector<128x128xf32>, vector<8x128xf32> -> vector<8x128xf32>
    %24 = vector.broadcast %20 : vector<1x128xf32> to vector<8x128xf32>
    %25 = arith.addf %24, %23 : vector<8x128xf32>
    %c1_17 = arith.constant 1 : index
    %c0_18 = arith.constant 0 : index
    %c0_19 = arith.constant 0 : index
    %26 = vector.load %arg5[%c1_17, %c0_18, %c0_19] : memref<4x128x128xf32, #tpu.memory_space<vmem>>, vector<1x128x128xf32>
    %27 = vector.shape_cast %26 : vector<1x128x128xf32> to vector<128x128xf32>
    %cst_20 = arith.constant dense<0.000000e+00> : vector<8x128xf32>
    %28 = tpu.matmul %1, %27, %cst_20 {dimension_numbers = #tpu.dot_dimension_numbers<[1], [0], [0], [1], [0, 0, 1, 1], [], []>} : vector<8x128xf32>, vector<128x128xf32>, vector<8x128xf32> -> vector<8x128xf32>
    %29 = arith.addf %25, %28 : vector<8x128xf32>
    %30 = arith.negf %29 : vector<8x128xf32>
    %31 = math.exp %30 : vector<8x128xf32>
    %cst_21 = arith.constant 1.000000e+00 : f32
    %32 = vector.broadcast %cst_21 : f32 to vector<8x128xf32>
    %33 = arith.addf %32, %31 : vector<8x128xf32>
    %34 = arith.divf %32, %33 : vector<8x128xf32>
    %35 = vector.extract_strided_slice %2 {offsets = [2, 0, 0], sizes = [1, 1, 128], strides = [1, 1, 1]} : vector<4x1x128xf32> to vector<1x1x128xf32>
    %36 = vector.shape_cast %35 : vector<1x1x128xf32> to vector<1x128xf32>
    %c2 = arith.constant 2 : index
    %c0_22 = arith.constant 0 : index
    %c0_23 = arith.constant 0 : index
    %37 = vector.load %arg4[%c2, %c0_22, %c0_23] : memref<4x128x128xf32, #tpu.memory_space<vmem>>, vector<1x128x128xf32>
    %38 = vector.shape_cast %37 : vector<1x128x128xf32> to vector<128x128xf32>
    %cst_24 = arith.constant dense<0.000000e+00> : vector<8x128xf32>
    %39 = tpu.matmul %0, %38, %cst_24 {dimension_numbers = #tpu.dot_dimension_numbers<[1], [0], [0], [1], [0, 0, 1, 1], [], []>} : vector<8x128xf32>, vector<128x128xf32>, vector<8x128xf32> -> vector<8x128xf32>
    %40 = vector.broadcast %36 : vector<1x128xf32> to vector<8x128xf32>
    %41 = arith.addf %40, %39 : vector<8x128xf32>
    %c2_25 = arith.constant 2 : index
    %c0_26 = arith.constant 0 : index
    %c0_27 = arith.constant 0 : index
    %42 = vector.load %arg5[%c2_25, %c0_26, %c0_27] : memref<4x128x128xf32, #tpu.memory_space<vmem>>, vector<1x128x128xf32>
    %43 = vector.shape_cast %42 : vector<1x128x128xf32> to vector<128x128xf32>
    %cst_28 = arith.constant dense<0.000000e+00> : vector<8x128xf32>
    %44 = tpu.matmul %1, %43, %cst_28 {dimension_numbers = #tpu.dot_dimension_numbers<[1], [0], [0], [1], [0, 0, 1, 1], [], []>} : vector<8x128xf32>, vector<128x128xf32>, vector<8x128xf32> -> vector<8x128xf32>
    %45 = arith.addf %41, %44 : vector<8x128xf32>
    %46 = math.tanh %45 : vector<8x128xf32>
    %47 = vector.extract_strided_slice %2 {offsets = [3, 0, 0], sizes = [1, 1, 128], strides = [1, 1, 1]} : vector<4x1x128xf32> to vector<1x1x128xf32>
    %48 = vector.shape_cast %47 : vector<1x1x128xf32> to vector<1x128xf32>
    %c3 = arith.constant 3 : index
    %c0_29 = arith.constant 0 : index
    %c0_30 = arith.constant 0 : index
    %49 = vector.load %arg4[%c3, %c0_29, %c0_30] : memref<4x128x128xf32, #tpu.memory_space<vmem>>, vector<1x128x128xf32>
    %50 = vector.shape_cast %49 : vector<1x128x128xf32> to vector<128x128xf32>
    %cst_31 = arith.constant dense<0.000000e+00> : vector<8x128xf32>
    %51 = tpu.matmul %0, %50, %cst_31 {dimension_numbers = #tpu.dot_dimension_numbers<[1], [0], [0], [1], [0, 0, 1, 1], [], []>} : vector<8x128xf32>, vector<128x128xf32>, vector<8x128xf32> -> vector<8x128xf32>
    %52 = vector.broadcast %48 : vector<1x128xf32> to vector<8x128xf32>
    %53 = arith.addf %52, %51 : vector<8x128xf32>
    %c3_32 = arith.constant 3 : index
    %c0_33 = arith.constant 0 : index
    %c0_34 = arith.constant 0 : index
    %54 = vector.load %arg5[%c3_32, %c0_33, %c0_34] : memref<4x128x128xf32, #tpu.memory_space<vmem>>, vector<1x128x128xf32>
    %55 = vector.shape_cast %54 : vector<1x128x128xf32> to vector<128x128xf32>
    %cst_35 = arith.constant dense<0.000000e+00> : vector<8x128xf32>
    %56 = tpu.matmul %1, %55, %cst_35 {dimension_numbers = #tpu.dot_dimension_numbers<[1], [0], [0], [1], [0, 0, 1, 1], [], []>} : vector<8x128xf32>, vector<128x128xf32>, vector<8x128xf32> -> vector<8x128xf32>
    %57 = arith.addf %53, %56 : vector<8x128xf32>
    %58 = arith.negf %57 : vector<8x128xf32>
    %59 = math.exp %58 : vector<8x128xf32>
    %cst_36 = arith.constant 1.000000e+00 : f32
    %60 = vector.broadcast %cst_36 : f32 to vector<8x128xf32>
    %61 = arith.addf %60, %59 : vector<8x128xf32>
    %62 = arith.divf %60, %61 : vector<8x128xf32>
    %c0_37 = arith.constant 0 : index
    %c0_38 = arith.constant 0 : index
    %63 = vector.load %arg7[%c0_37, %c0_38] : memref<8x128xf32, #tpu.memory_space<vmem>>, vector<8x128xf32>
    %64 = arith.mulf %63, %34 : vector<8x128xf32>
    %65 = arith.mulf %18, %46 : vector<8x128xf32>
    %66 = arith.addf %64, %65 : vector<8x128xf32>
    %67 = math.tanh %66 : vector<8x128xf32>
    %68 = arith.mulf %62, %67 : vector<8x128xf32>
    %c0_39 = arith.constant 0 : index
    %c0_40 = arith.constant 0 : index
    %69 = vector.load %arg9[%c0_39, %c0_40] : memref<8x128xf32, #tpu.memory_space<vmem>>, vector<8x128xf32>
    tpu.vector_store %arg9[%c0_39, %c0_40], %66 {strides = array<i32>} : memref<8x128xf32, #tpu.memory_space<vmem>>, vector<8x128xf32>,
    %c0_41 = arith.constant 0 : index
    %c0_42 = arith.constant 0 : index
    %70 = vector.load %arg8[%c0_41, %c0_42] : memref<8x128xf32, #tpu.memory_space<vmem>>, vector<8x128xf32>
    tpu.vector_store %arg8[%c0_41, %c0_42], %68 {strides = array<i32>} : memref<8x128xf32, #tpu.memory_space<vmem>>, vector<8x128xf32>,
    return
  }
  func.func @transform_0(%arg0: i32, %arg1: i32) -> (i32, i32) {
    %c0_i32 = arith.constant 0 : i32
    %c0_i32_0 = arith.constant 0 : i32
    return %arg1, %c0_i32 : i32, i32
  }
  func.func @transform_1(%arg0: i32, %arg1: i32) -> (i32, i32) {
    %c0_i32 = arith.constant 0 : i32
    %c0_i32_0 = arith.constant 0 : i32
    return %arg1, %c0_i32 : i32, i32
  }
  func.func @transform_2(%arg0: i32, %arg1: i32) -> (i32, i32, i32) {
    %c0_i32 = arith.constant 0 : i32
    %c0_i32_0 = arith.constant 0 : i32
    %c0_i32_1 = arith.constant 0 : i32
    return %c0_i32, %c0_i32_0, %arg0 : i32, i32, i32
  }
  func.func @transform_3(%arg0: i32, %arg1: i32) -> (i32, i32, i32) {
    %c0_i32 = arith.constant 0 : i32
    %c0_i32_0 = arith.constant 0 : i32
    %c0_i32_1 = arith.constant 0 : i32
    return %c0_i32, %c0_i32_0, %arg0 : i32, i32, i32
  }
  func.func @transform_4(%arg0: i32, %arg1: i32) -> (i32, i32, i32) {
    %c0_i32 = arith.constant 0 : i32
    %c0_i32_0 = arith.constant 0 : i32
    %c0_i32_1 = arith.constant 0 : i32
    return %c0_i32, %c0_i32_0, %arg0 : i32, i32, i32
  }
  func.func @transform_5(%arg0: i32, %arg1: i32) -> (i32, i32) {
    %c0_i32 = arith.constant 0 : i32
    return %arg1, %arg0 : i32, i32
  }
  func.func @transform_6(%arg0: i32, %arg1: i32) -> (i32, i32) {
    %c0_i32 = arith.constant 0 : i32
    return %arg1, %arg0 : i32, i32
  }
  func.func @transform_7(%arg0: i32, %arg1: i32) -> (i32, i32) {
    %c0_i32 = arith.constant 0 : i32
    return %arg1, %arg0 : i32, i32
  }
}

</mosaic_0001>

<bundles_post_ra>
// kernel: lstm_cell.1
= control target key start
LH: loop header
LB: loop body
LE: loop exit
PB: predicated region body
PF: predicated region fallthrough
CT: control target
= control target key end

     0   :  { %13 = vsyncpa [#allocation3], 0  ;;  %s711_s0 = inlined_call_operand.vmem [shape: f32[8,128], index: 0, kind: input, shape index: {}]   ;;  %s712_s1 = inlined_call_operand.vmem [shape: f32[8,128], index: 1, kind: input, shape index: {}]   ;;  %s713_s2 = inlined_call_operand.hbm [shape: f32[4,128,128], index: 2, kind: input, shape index: {}]   ;;  %s714_s3 = inlined_call_operand.hbm [shape: f32[4,128,128], index: 3, kind: input, shape index: {}]   ;;  %s715_s4 = inlined_call_operand.vmem [shape: f32[4,1,128], index: 4, kind: input, shape index: {}]   ;;  %s716_s5 = inlined_call_operand.vmem [shape: f32[8,128], index: 5, kind: input, shape index: {}]   ;;  %s717_s6 = inlined_call_operand.hbm [shape: f32[8,128], index: 6, kind: output, shape index: {0}]   ;;  %s718_s7 = inlined_call_operand.hbm [shape: f32[8,128], index: 7, kind: output, shape index: {1}]  }
   0x1   :  { %14 = vsyncpa [#allocation6], 0 }
   0x2   :  { %15 = vsyncpa [#allocation4], 0 }
   0x3   :  { %16 = vsyncpa [#allocation9], 0  ;;  %s25_s26 = sshll.u32 %s713_s2, 4  ;;  %s612_s27 = smov [#allocation2]   ;;  %s26_s26 = int_to_ptr.hbm [resolvable:$true] %s25_s26 }
   0x4   :  { %s27_s28 = sshll.u32 %s612_s27, 4  ;;  %s38_s8 = sshll.u32 %s714_s3, 4  ;;  %s28_s28 = int_to_ptr.vmem [resolvable:$true] %s27_s28  ;;  %s39_s8 = int_to_ptr.hbm [resolvable:$true] %s38_s8 }
   0x5   :  { %s613_s9 = smov 128   ;;  %s614_s10 = smov 8  }
   0x6   :  { %33 = dma.hbm_to_vmem [thread:$0]  %s26_s26, 8192, %s28_s28, [#allocation3], %s613_s9, %s613_s9, %s614_s10  }
   0x7   :  { %s615_s11 = smov [#allocation5]  }
   0x8   :  { %s40_s12 = sshll.u32 %s615_s11, 4  ;;  %s41_s12 = int_to_ptr.vmem [resolvable:$true] %s40_s12 }
   0x9   :  { %46 = dma.hbm_to_vmem [thread:$0]  %s39_s8, 8192, %s41_s12, [#allocation6], %s613_s9, %s613_s9, %s614_s10  }
   0xa   :  { %604 = dma.done.wait [#allocation3], 8192  }
   0xb   :  { %605 = vsyncadd [#allocation3], 4294959104 }
   0xc   :  { %606 = dma.done.wait [#allocation6], 8192  }
   0xd   :  { %607 = vsyncadd [#allocation6], 4294959104  ;;  %v177_v0 = vld [vmem:[#allocation2 + $0xf8] sm:$0xff]  ;;  %v176_v1 = vld [vmem:[#allocation2 + $0xf0] sm:$0xff]  ;;  %s616_s22 = smov [#allocation8]   ;;  %s463_s26 = sshll.u32 %s718_s7, 4  ;;  %s464_s26 = int_to_ptr.hbm [resolvable:$true] %s463_s26 }
   0xe   :  { %v218_v2 = vld [vmem:[#allocation5 + $0xf8] sm:$0xff]  ;;  %178 = vmatpush.msra.mxu2 %v177_v0  ;;  %v217_v4 = vld [vmem:[#allocation5 + $0xf0] sm:$0xff]  ;;  %v175_v5 = vld [vmem:[#allocation2 + $0xe8] sm:$0xff]  ;;  %s461_s23 = sshll.u32 %s616_s22, 4  ;;  %s452_s29 = sshll.u32 %s717_s6, 4  ;;  %s462_s23 = int_to_ptr.vmem [resolvable:$true] %s461_s23  ;;  %s453_s29 = int_to_ptr.hbm [resolvable:$true] %s452_s29 }
   0xf   :  { %219 = vmatpush.msra.mxu3 %v218_v2  ;;  %v80_v3 = vld [vmem:[#allocation2 + $0x78] sm:$0xff]  ;;  %v79_v6 = vld [vmem:[#allocation2 + $0x70] sm:$0xff]  ;;  %v216_v8 = vld [vmem:[#allocation5 + $0xe8] sm:$0xff] }
  0x10   :  { %81 = vmatpush.msra.mxu0 %v80_v3  ;;  %v120_v7 = vld [vmem:[#allocation5 + $0x78] sm:$0xff]  ;;  %179 = vmatpush.msra.mxu2 %v176_v1  ;;  %v78_v9 = vld [vmem:[#allocation2 + $0x68] sm:$0xff]  ;;  %v119_v10 = vld [vmem:[#allocation5 + $0x70] sm:$0xff] }
  0x11   :  { %220 = vmatpush.msra.mxu3 %v217_v4  ;;  %121 = vmatpush.msra.mxu1 %v120_v7  ;;  %v174_v11 = vld [vmem:[#allocation2 + $0xe0] sm:$0xff]  ;;  %v118_v14 = vld [vmem:[#allocation5 + $0x68] sm:$0xff]  ;;  %v173_v15 = vld [vmem:[#allocation2 + $0xd8] sm:$0xff] }
  0x12   :  { %82 = vmatpush.msra.mxu0 %v79_v6  ;;  %v215_v12 = vld [vmem:[#allocation5 + $0xe0] sm:$0xff]  ;;  %180 = vmatpush.msra.mxu2 %v175_v5  ;;  %v214_v16 = vld [vmem:[#allocation5 + $0xd8] sm:$0xff]  ;;  %v172_v19 = vld [vmem:[#allocation2 + $0xd0] sm:$0xff] }
  0x13   :  { %221 = vmatpush.msra.mxu3 %v216_v8  ;;  %v77_v13 = vld [vmem:[#allocation2 + $0x60] sm:$0xff]  ;;  %122 = vmatpush.msra.mxu1 %v119_v10  ;;  %v76_v17 = vld [vmem:[#allocation2 + $0x58] sm:$0xff]  ;;  %v213_v20 = vld [vmem:[#allocation5 + $0xd0] sm:$0xff] }
  0x14   :  { %83 = vmatpush.msra.mxu0 %v78_v9  ;;  %181 = vmatpush.msra.mxu2 %v174_v11  ;;  %v117_v18 = vld [vmem:[#allocation5 + $0x60] sm:$0xff]  ;;  %v75_v21 = vld [vmem:[#allocation2 + $0x50] sm:$0xff]  ;;  %v116_v22 = vld [vmem:[#allocation5 + $0x58] sm:$0xff] }
  0x15   :  { %222 = vmatpush.msra.mxu3 %v215_v12  ;;  %123 = vmatpush.msra.mxu1 %v118_v14  ;;  %v171_v23 = vld [vmem:[#allocation2 + $0xc8] sm:$0xff]  ;;  %v115_v26 = vld [vmem:[#allocation5 + $0x50] sm:$0xff]  ;;  %v170_v27 = vld [vmem:[#allocation2 + $0xc0] sm:$0xff] }
  0x16   :  { %84 = vmatpush.msra.mxu0 %v77_v13  ;;  %182 = vmatpush.msra.mxu2 %v173_v15  ;;  %v212_v24 = vld [vmem:[#allocation5 + $0xc8] sm:$0xff]  ;;  %v211_v28 = vld [vmem:[#allocation5 + $0xc0] sm:$0xff]  ;;  %v169_v31 = vld [vmem:[#allocation2 + $0xb8] sm:$0xff] }
  0x17   :  { %223 = vmatpush.msra.mxu3 %v214_v16  ;;  %124 = vmatpush.msra.mxu1 %v117_v18  ;;  %v74_v25 = vld [vmem:[#allocation2 + $0x48] sm:$0xff]  ;;  %v73_v29 = vld [vmem:[#allocation2 + $0x40] sm:$0xff]  ;;  %v210_v32 = vld [vmem:[#allocation5 + $0xb8] sm:$0xff] }
  0x18   :  { %85 = vmatpush.msra.mxu0 %v76_v17  ;;  %183 = vmatpush.msra.mxu2 %v172_v19  ;;  %v114_v30 = vld [vmem:[#allocation5 + $0x48] sm:$0xff]  ;;  %v72_v33 = vld [vmem:[#allocation2 + $0x38] sm:$0xff]  ;;  %v113_v34 = vld [vmem:[#allocation5 + $0x40] sm:$0xff] }
  0x19   :  { %224 = vmatpush.msra.mxu3 %v213_v20  ;;  %125 = vmatpush.msra.mxu1 %v116_v22  ;;  %v168_v35 = vld [vmem:[#allocation2 + $0xb0] sm:$0xff]  ;;  %v112_v38 = vld [vmem:[#allocation5 + $0x38] sm:$0xff]  ;;  %v167_v39 = vld [vmem:[#allocation2 + $0xa8] sm:$0xff] }
  0x1a   :  { %86 = vmatpush.msra.mxu0 %v75_v21  ;;  %184 = vmatpush.msra.mxu2 %v171_v23  ;;  %v209_v36 = vld [vmem:[#allocation5 + $0xb0] sm:$0xff]  ;;  %v208_v40 = vld [vmem:[#allocation5 + $0xa8] sm:$0xff]  ;;  %v166_v43 = vld [vmem:[#allocation2 + $0xa0] sm:$0xff] }
  0x1b   :  { %225 = vmatpush.msra.mxu3 %v212_v24  ;;  %126 = vmatpush.msra.mxu1 %v115_v26  ;;  %v71_v37 = vld [vmem:[#allocation2 + $0x30] sm:$0xff]  ;;  %v70_v41 = vld [vmem:[#allocation2 + $0x28] sm:$0xff]  ;;  %v207_v44 = vld [vmem:[#allocation5 + $0xa0] sm:$0xff] }
  0x1c   :  { %87 = vmatpush.msra.mxu0 %v74_v25  ;;  %185 = vmatpush.msra.mxu2 %v170_v27  ;;  %v111_v42 = vld [vmem:[#allocation5 + $0x30] sm:$0xff]  ;;  %v69_v45 = vld [vmem:[#allocation2 + $0x20] sm:$0xff]  ;;  %v110_v46 = vld [vmem:[#allocation5 + $0x28] sm:$0xff] }
  0x1d   :  { %226 = vmatpush.msra.mxu3 %v211_v28  ;;  %127 = vmatpush.msra.mxu1 %v114_v30  ;;  %v165_v47 = vld [vmem:[#allocation2 + $0x98] sm:$0xff]  ;;  %v109_v50 = vld [vmem:[#allocation5 + $0x20] sm:$0xff]  ;;  %v164_v51 = vld [vmem:[#allocation2 + $0x90] sm:$0xff] }
  0x1e   :  { %88 = vmatpush.msra.mxu0 %v73_v29  ;;  %186 = vmatpush.msra.mxu2 %v169_v31  ;;  %v206_v48 = vld [vmem:[#allocation5 + $0x98] sm:$0xff]  ;;  %v205_v52 = vld [vmem:[#allocation5 + $0x90] sm:$0xff]  ;;  %v163_v55 = vld [vmem:[#allocation2 + $0x88] sm:$0xff] }
  0x1f   :  { %227 = vmatpush.msra.mxu3 %v210_v32  ;;  %128 = vmatpush.msra.mxu1 %v113_v34  ;;  %v68_v49 = vld [vmem:[#allocation2 + $0x18] sm:$0xff]  ;;  %v67_v53 = vld [vmem:[#allocation2 + $0x10] sm:$0xff]  ;;  %v204_v56 = vld [vmem:[#allocation5 + $0x88] sm:$0xff] }
  0x20   :  { %89 = vmatpush.msra.mxu0 %v72_v33  ;;  %187 = vmatpush.msra.mxu2 %v168_v35  ;;  %v108_v54 = vld [vmem:[#allocation5 + $0x18] sm:$0xff]  ;;  %v66_v57 = vld [vmem:[#allocation2 + $0x8] sm:$0xff]  ;;  %v107_v58 = vld [vmem:[#allocation5 + $0x10] sm:$0xff] }
  0x21   :  { %228 = vmatpush.msra.mxu3 %v209_v36  ;;  %129 = vmatpush.msra.mxu1 %v112_v38  ;;  %v162_v59 = vld [vmem:[#allocation2 + $0x80] sm:$0xff]  ;;  %v355_v61 = vld [vmem:[#allocation2 + $0x1f8] sm:$0xff]  ;;  %v106_v63 = vld [vmem:[#allocation5 + $0x8] sm:$0xff] }
  0x22   :  { %90 = vmatpush.msra.mxu0 %v71_v37  ;;  %188 = vmatpush.msra.mxu2 %v167_v39  ;;  %v203_v60 = vld [vmem:[#allocation5 + $0x80] sm:$0xff]  ;;  %v396_v0 = vld [vmem:[#allocation5 + $0x1f8] sm:$0xff]  ;;  %v354_v1 = vld [vmem:[#allocation2 + $0x1f0] sm:$0xff] }
  0x23   :  { %229 = vmatpush.msra.mxu3 %v208_v40  ;;  %130 = vmatpush.msra.mxu1 %v111_v42  ;;  %v65_v62 = vld [vmem:[#allocation2] sm:$0xff]  ;;  %v275_v2 = vld [vmem:[#allocation2 + $0x178] sm:$0xff]  ;;  %v395_v4 = vld [vmem:[#allocation5 + $0x1f0] sm:$0xff] }
  0x24   :  { %91 = vmatpush.msra.mxu0 %v70_v41  ;;  %189 = vmatpush.msra.mxu2 %v166_v43  ;;  %v105_v3 = vld [vmem:[#allocation5] sm:$0xff]  ;;  %v353_v5 = vld [vmem:[#allocation2 + $0x1e8] sm:$0xff]  ;;  %v274_v6 = vld [vmem:[#allocation2 + $0x170] sm:$0xff] }
  0x25   :  { %230 = vmatpush.msra.mxu3 %v207_v44  ;;  %131 = vmatpush.msra.mxu1 %v110_v46  ;;  %v316_v7 = vld [vmem:[#allocation5 + $0x178] sm:$0xff]  ;;  %v394_v8 = vld [vmem:[#allocation5 + $0x1e8] sm:$0xff]  ;;  %v352_v9 = vld [vmem:[#allocation2 + $0x1e0] sm:$0xff] }
  0x26   :  { %92 = vmatpush.msra.mxu0 %v69_v45  ;;  %190 = vmatpush.msra.mxu2 %v165_v47  ;;  %v273_v10 = vld [vmem:[#allocation2 + $0x168] sm:$0xff]  ;;  %v667_v11 = vld [vmem:[%s711_s0] sm:$0xff]  ;;  %v315_v12 = vld [vmem:[#allocation5 + $0x170] sm:$0xff] }
  0x27   :  { %231 = vmatpush.msra.mxu3 %v206_v48  ;;  %132 = vmatpush.msra.mxu1 %v109_v50  ;;  %v351_v13 = vld [vmem:[#allocation2 + $0x1d8] sm:$0xff]  ;;  %v393_v14 = vld [vmem:[#allocation5 + $0x1e0] sm:$0xff]  ;;  %v314_v17 = vld [vmem:[#allocation5 + $0x168] sm:$0xff] }
  0x28   :  { %93 = vmatpush.msra.mxu0 %v68_v49  ;;  %191 = vmatpush.msra.mxu2 %v164_v51  ;;  %v672_v15 = vld [vmem:[%s712_s1] sm:$0xff]  ;;  %v350_v18 = vld [vmem:[#allocation2 + $0x1d0] sm:$0xff]  ;;  %v392_v19 = vld [vmem:[#allocation5 + $0x1d8] sm:$0xff] }
  0x29   :  { %232 = vmatpush.msra.mxu3 %v205_v52  ;;  %133 = vmatpush.msra.mxu1 %v108_v54  ;;  %v272_v16 = vld [vmem:[#allocation2 + $0x160] sm:$0xff]  ;;  %v271_v20 = vld [vmem:[#allocation2 + $0x158] sm:$0xff]  ;;  %v349_v22 = vld [vmem:[#allocation2 + $0x1c8] sm:$0xff] }
  0x2a   :  { %94 = vmatpush.msra.mxu0 %v67_v53  ;;  %192 = vmatpush.msra.mxu2 %v163_v55  ;;  %v313_v21 = vld [vmem:[#allocation5 + $0x160] sm:$0xff]  ;;  %v391_v23 = vld [vmem:[#allocation5 + $0x1d0] sm:$0xff]  ;;  %v312_v25 = vld [vmem:[#allocation5 + $0x158] sm:$0xff] }
  0x2b   :  { %233 = vmatpush.msra.mxu3 %v204_v56  ;;  %134 = vmatpush.msra.mxu1 %v107_v58  ;;  %v270_v24 = vld [vmem:[#allocation2 + $0x150] sm:$0xff]  ;;  %v348_v26 = vld [vmem:[#allocation2 + $0x1c0] sm:$0xff]  ;;  %v390_v27 = vld [vmem:[#allocation5 + $0x1c8] sm:$0xff] }
  0x2c   :  { %95 = vmatpush.msra.mxu0 %v66_v57  ;;  %193 = vmatpush.msra.mxu2 %v162_v59  ;;  %v269_v28 = vld [vmem:[#allocation2 + $0x148] sm:$0xff]  ;;  %v311_v29 = vld [vmem:[#allocation5 + $0x150] sm:$0xff]  ;;  %v347_v30 = vld [vmem:[#allocation2 + $0x1b8] sm:$0xff] }
  0x2d   :  { %234 = vmatpush.msra.mxu3 %v203_v60  ;;  %135 = vmatpush.msra.mxu1 %v106_v63  ;;  %v389_v31 = vld [vmem:[#allocation5 + $0x1c0] sm:$0xff]  ;;  %v310_v33 = vld [vmem:[#allocation5 + $0x148] sm:$0xff]  ;;  %v346_v34 = vld [vmem:[#allocation2 + $0x1b0] sm:$0xff] }
  0x2e   :  { %356 = vmatpush.msrb.mxu2 %v355_v61  ;;  %96 = vmatpush.msra.mxu0 %v65_v62  ;;  %v268_v32 = vld [vmem:[#allocation2 + $0x140] sm:$0xff]  ;;  %v388_v35 = vld [vmem:[#allocation5 + $0x1b8] sm:$0xff]  ;;  %v345_v38 = vld [vmem:[#allocation2 + $0x1a8] sm:$0xff] }
  0x2f   :  { %397 = vmatpush.msrb.mxu3 %v396_v0  ;;  %136 = vmatpush.msra.mxu1 %v105_v3  ;;  %v267_v36 = vld [vmem:[#allocation2 + $0x138] sm:$0xff]  ;;  %v309_v37 = vld [vmem:[#allocation5 + $0x140] sm:$0xff]  ;;  %v387_v39 = vld [vmem:[#allocation5 + $0x1b0] sm:$0xff] }
  0x30   :  { %357 = vmatpush.msrb.mxu2 %v354_v1  ;;  %276 = vmatpush.msrb.mxu0 %v275_v2  ;;  %v266_v40 = vld [vmem:[#allocation2 + $0x130] sm:$0xff]  ;;  %v308_v41 = vld [vmem:[#allocation5 + $0x138] sm:$0xff]  ;;  %v344_v42 = vld [vmem:[#allocation2 + $0x1a0] sm:$0xff] }
  0x31   :  { %398 = vmatpush.msrb.mxu3 %v395_v4  ;;  %317 = vmatpush.msrb.mxu1 %v316_v7  ;;  %v386_v43 = vld [vmem:[#allocation5 + $0x1a8] sm:$0xff]  ;;  %v307_v45 = vld [vmem:[#allocation5 + $0x130] sm:$0xff]  ;;  %v343_v46 = vld [vmem:[#allocation2 + $0x198] sm:$0xff] }
  0x32   :  { %358 = vmatpush.msrb.mxu2 %v353_v5  ;;  %277 = vmatpush.msrb.mxu0 %v274_v6  ;;  %v265_v44 = vld [vmem:[#allocation2 + $0x128] sm:$0xff]  ;;  %v385_v47 = vld [vmem:[#allocation5 + $0x1a0] sm:$0xff]  ;;  %v342_v50 = vld [vmem:[#allocation2 + $0x190] sm:$0xff] }
  0x33   :  { %399 = vmatpush.msrb.mxu3 %v394_v8  ;;  %194 = vmatmul.f32.vlgmr.msra.gmra.mxu2 %v667_v11  ;;  %v264_v48 = vld [vmem:[#allocation2 + $0x120] sm:$0xff]  ;;  %v306_v49 = vld [vmem:[#allocation5 + $0x128] sm:$0xff]  ;;  %v384_v51 = vld [vmem:[#allocation5 + $0x198] sm:$0xff] }
  0x34   :  { %359 = vmatpush.msrb.mxu2 %v352_v9  ;;  %278 = vmatpush.msrb.mxu0 %v273_v10  ;;  %v263_v52 = vld [vmem:[#allocation2 + $0x118] sm:$0xff]  ;;  %v305_v53 = vld [vmem:[#allocation5 + $0x120] sm:$0xff]  ;;  %v341_v54 = vld [vmem:[#allocation2 + $0x188] sm:$0xff] }
  0x35   :  { %318 = vmatpush.msrb.mxu1 %v315_v12  ;;  %400 = vmatpush.msrb.mxu3 %v393_v14  ;;  %v383_v55 = vld [vmem:[#allocation5 + $0x190] sm:$0xff]  ;;  %v304_v57 = vld [vmem:[#allocation5 + $0x118] sm:$0xff]  ;;  %v340_v58 = vld [vmem:[#allocation2 + $0x180] sm:$0xff] }
  0x36   :  { %360 = vmatpush.msrb.mxu2 %v351_v13  ;;  %235 = vmatmul.f32.vlgmr.msra.gmra.mxu3 %v672_v15  ;;  %v262_v56 = vld [vmem:[#allocation2 + $0x110] sm:$0xff]  ;;  %v382_v59 = vld [vmem:[#allocation5 + $0x188] sm:$0xff]  ;;  %v381_v62 = vld [vmem:[#allocation5 + $0x180] sm:$0xff] }
  0x37   :  { %279 = vmatpush.msrb.mxu0 %v272_v16  ;;  %319 = vmatpush.msrb.mxu1 %v314_v17  ;;  %v261_v60 = vld [vmem:[#allocation2 + $0x108] sm:$0xff]  ;;  %v303_v61 = vld [vmem:[#allocation5 + $0x110] sm:$0xff]  ;;  %v260_v63 = vld [vmem:[#allocation2 + $0x100] sm:$0xff] }
  0x38   :  { %361 = vmatpush.msrb.mxu2 %v350_v18  ;;  %401 = vmatpush.msrb.mxu3 %v392_v19  ;;  %v302_v0 = vld [vmem:[#allocation5 + $0x108] sm:$0xff]  ;;  %v301_v1 = vld [vmem:[#allocation5 + $0x100] sm:$0xff] }
  0x39   :  { %280 = vmatpush.msrb.mxu0 %v271_v20  ;;  %320 = vmatpush.msrb.mxu1 %v313_v21  ;;  %v488_v2 = vld [vmem:[%s715_s4] ss:$0 sm:$0xff]  ;;  %v489_v3 = vld [vmem:[%s715_s4 + $0x1] ss:$0 sm:$0xff]  ;;  %v490_v18 = vld [vmem:[%s715_s4 + $0x2] ss:$0 sm:$0xff] }
  0x3a   :  { %362 = vmatpush.msrb.mxu2 %v349_v22  ;;  %402 = vmatpush.msrb.mxu3 %v391_v23  ;;  %v491_v23 = vld [vmem:[%s715_s4 + $0x3] ss:$0 sm:$0xff] }
  0x3b   :  { %97 = vmatmul.f32.vlgmr.msra.gmra.mxu0 %v667_v11  ;;  %321 = vmatpush.msrb.mxu1 %v312_v25 }
  0x3c   :  { %281 = vmatpush.msrb.mxu0 %v270_v24  ;;  %363 = vmatpush.msrb.mxu2 %v348_v26 }
  0x3d   :  { %403 = vmatpush.msrb.mxu3 %v390_v27  ;;  %137 = vmatmul.f32.vlgmr.msra.gmra.mxu1 %v672_v15 }
  0x3e   :  { %282 = vmatpush.msrb.mxu0 %v269_v28  ;;  %322 = vmatpush.msrb.mxu1 %v311_v29 }
  0x3f   :  { %364 = vmatpush.msrb.mxu2 %v347_v30  ;;  %404 = vmatpush.msrb.mxu3 %v389_v31 }
  0x40   :  { %283 = vmatpush.msrb.mxu0 %v268_v32  ;;  %323 = vmatpush.msrb.mxu1 %v310_v33 }
  0x41   :  { %365 = vmatpush.msrb.mxu2 %v346_v34  ;;  %405 = vmatpush.msrb.mxu3 %v388_v35 }
  0x42   :  { %284 = vmatpush.msrb.mxu0 %v267_v36  ;;  %324 = vmatpush.msrb.mxu1 %v309_v37 }
  0x43   :  { %366 = vmatpush.msrb.mxu2 %v345_v38  ;;  %406 = vmatpush.msrb.mxu3 %v387_v39 }
  0x44   :  { %285 = vmatpush.msrb.mxu0 %v266_v40  ;;  %325 = vmatpush.msrb.mxu1 %v308_v41 }
  0x45   :  { %367 = vmatpush.msrb.mxu2 %v344_v42  ;;  %407 = vmatpush.msrb.mxu3 %v386_v43 }
  0x46   :  { %286 = vmatpush.msrb.mxu0 %v265_v44  ;;  %326 = vmatpush.msrb.mxu1 %v307_v45  ;;  %v437_v45 = vld [vmem:[%s716_s5] sm:$0xff]  ;;  %s617_s5 = smov [#allocation7]  }
  0x47   :  { %368 = vmatpush.msrb.mxu2 %v343_v46  ;;  %408 = vmatpush.msrb.mxu3 %v385_v47  ;;  %s450_s7 = sshll.u32 %s617_s5, 4  ;;  %s451_s7 = int_to_ptr.vmem [resolvable:$true] %s450_s7 }
  0x48   :  { %287 = vmatpush.msrb.mxu0 %v264_v48  ;;  %327 = vmatpush.msrb.mxu1 %v306_v49 }
  0x49   :  { %369 = vmatpush.msrb.mxu2 %v342_v50  ;;  %409 = vmatpush.msrb.mxu3 %v384_v51 }
  0x4a   :  { %288 = vmatpush.msrb.mxu0 %v263_v52  ;;  %328 = vmatpush.msrb.mxu1 %v305_v53 }
  0x4b   :  { %370 = vmatpush.msrb.mxu2 %v341_v54  ;;  %410 = vmatpush.msrb.mxu3 %v383_v55 }
  0x4c   :  { %289 = vmatpush.msrb.mxu0 %v262_v56  ;;  %329 = vmatpush.msrb.mxu1 %v304_v57 }
  0x4d   :  { %371 = vmatpush.msrb.mxu2 %v340_v58  ;;  %411 = vmatpush.msrb.mxu3 %v382_v59 }
  0x4e   :  { %290 = vmatpush.msrb.mxu0 %v261_v60  ;;  %330 = vmatpush.msrb.mxu1 %v303_v61 }
  0x4f   :  { %372 = vmatmul.f32.vlgmr.msrb.gmra.mxu2 %v667_v11  ;;  %412 = vmatpush.msrb.mxu3 %v381_v62 }
  0x50   :  { %291 = vmatpush.msrb.mxu0 %v260_v63  ;;  %331 = vmatpush.msrb.mxu1 %v302_v0 }
  0x51   :  { %413 = vmatmul.f32.vlgmr.msrb.gmra.mxu3 %v672_v15  ;;  %292 = vmatmul.f32.vlgmr.msrb.gmra.mxu0 %v667_v11 }
  0x52   :  { %332 = vmatpush.msrb.mxu1 %v301_v1 }
  0x53   :  { %333 = vmatmul.f32.vlgmr.msrb.gmra.mxu1 %v672_v15 }
  0xb6   :  { %v195_v5 = vpop.f32.mrf.mxu2 }
  0xb7   :  { %v201_v7 = vadd.f32 %v489_v3, %v195_v5 }
  0xb8   :  { %v98_v4 = vpop.f32.mrf.mxu0 }
  0xb9   :  { %v104_v6 = vadd.f32 %v488_v2, %v98_v4  ;;  %v236_v8 = vpop.f32.mrf.mxu3 }
  0xba   :  { %v138_v9 = vpop.f32.mrf.mxu1  ;;  %v239_v10 = vadd.f32 %v236_v8, %v201_v7 }
  0xbb   :  { %v141_v12 = vadd.f32 %v138_v9, %v104_v6 }
  0xbc   :  { %v480_v11 = vmul.f32 -1.442695, %v239_v10 }
  0xbd   :  { %v479_v13 = vmul.f32 -1.442695, %v141_v12 }
  0xbe   :  { %492 = vpow2.f32 %v480_v11 }
  0xbf   :  { %494 = vpow2.f32 %v479_v13 }
  0xc4   :  { %v493_v14 = vpop.eup %492 }
  0xc5   :  { %v495_v15 = vpop.eup %494  ;;  %v243_v16 = vadd.f32 1.0, %v493_v14 }
  0xc6   :  { %v145_v17 = vadd.f32 1.0, %v495_v15 }
  0xc7   :  { %496 = vrcp.f32 %v243_v16  ;;  %vm249_vm0 = vweird.f32 %v243_v16  ;;  %v255_v25 = vand.u32 2147483648, %v243_v16  ;;  %v253_v27 = vand.u32 2147483647, %v243_v16 }
  0xc8   :  { %498 = vrcp.f32 %v145_v17  ;;  %vm151_vm2 = vweird.f32 %v145_v17  ;;  %v157_v29 = vand.u32 2147483648, %v145_v17  ;;  %v155_v32 = vand.u32 2147483647, %v145_v17 }
  0xc9   :  { %v256_v38 = vor.u32 1.1754944e-38, %v255_v25  ;;  %vm254_vm6 = vcmp.eq.f32.partialorder %v253_v27, 8.507059e+37 }
  0xca   :  { %v158_v41 = vor.u32 1.1754944e-38, %v157_v29  ;;  %vm156_vm7 = vcmp.eq.f32.partialorder %v155_v32, 8.507059e+37 }
  0xcd   :  { %v497_v19 = vpop.eup %496 }
  0xce   :  { %v499_v20 = vpop.eup %498  ;;  %v245_v21 = vmul.f32 %v497_v19, %v243_v16  ;;  %v293_v22 = vpop.f32.mrf.mxu0  ;;  %vm250_vm1 = vweird.f32 %v497_v19 }
  0xcf   :  { %v147_v24 = vmul.f32 %v499_v20, %v145_v17  ;;  %v299_v26 = vadd.f32 %v490_v18, %v293_v22  ;;  %vm152_vm3 = vweird.f32 %v499_v20  ;;  %vm695_vm4 = vmor %vm249_vm0, %vm250_vm1 }
  0xd0   :  { %v246_v28 = vsub.f32 1.0, %v245_v21  ;;  %v334_v30 = vpop.f32.mrf.mxu1  ;;  %vm153_vm5 = vmor %vm151_vm2, %vm152_vm3 }
  0xd1   :  { %v148_v31 = vsub.f32 1.0, %v147_v24  ;;  %v337_v33 = vadd.f32 %v334_v30, %v299_v26 }
  0xd2   :  { %v373_v34 = vpop.f32.mrf.mxu2  ;;  %v247_v35 = vmul.f32 %v497_v19, %v246_v28 }
  0xd3   :  { %v379_v36 = vadd.f32 %v491_v23, %v373_v34  ;;  %v149_v39 = vmul.f32 %v499_v20, %v148_v31  ;;  %500 = vtanh.f32 %v337_v33 }
  0xd4   :  { %v414_v40 = vpop.f32.mrf.mxu3  ;;  %v248_v42 = vadd.f32 %v497_v19, %v247_v35 }
  0xd5   :  { %v417_v43 = vadd.f32 %v414_v40, %v379_v36  ;;  %v150_v44 = vadd.f32 %v499_v20, %v149_v39 }
  0xd6   :  { %v252_v46 = vsel %vm695_vm4, %v497_v19, %v248_v42 }
  0xd7   :  { %v481_v47 = vmul.f32 -1.442695, %v417_v43  ;;  %v154_v48 = vsel %vm153_vm5, %v499_v20, %v150_v44  ;;  %v257_v49 = vsel %vm254_vm6, %v256_v38, %v252_v46 }
  0xd8   :  { %v159_v50 = vsel %vm156_vm7, %v158_v41, %v154_v48  ;;  %v438_v51 = vmul.f32 %v437_v45, %v257_v49 }
  0xd9   :  { %502 = vpow2.f32 %v481_v47  ;;  %v501_v52 = vpop.eup %500 }
  0xda   :  { %v439_v53 = vmul.f32 %v501_v52, %v159_v50 }
  0xdc   :  { %v440_v54 = vadd.f32 %v439_v53, %v438_v51 }
  0xde   :  { %443 = vst [vmem:[#allocation8] sm:$0xff] %v440_v54 }
  0xdf   :  { %v503_v55 = vpop.eup %502  ;;  %466 = dma.vmem_to_hbm [thread:$0]  %s462_s23, 128, %s464_s26, [#allocation9]  }
  0xe0   :  { %v421_v56 = vadd.f32 1.0, %v503_v55 }
  0xe2   :  { %504 = vrcp.f32 %v421_v56  ;;  %v433_v60 = vand.u32 2147483648, %v421_v56  ;;  %v431_v62 = vand.u32 2147483647, %v421_v56  ;;  %vm427_vm9 = vweird.f32 %v421_v56 }
  0xe3   :  { %506 = vtanh.f32 %v440_v54 }
  0xe4   :  { %v434_v0 = vor.u32 1.1754944e-38, %v433_v60  ;;  %vm432_vm11 = vcmp.eq.f32.partialorder %v431_v62, 8.507059e+37 }
  0xe8   :  { %v505_v57 = vpop.eup %504 }
  0xe9   :  { %v423_v58 = vmul.f32 %v505_v57, %v421_v56  ;;  %vm428_vm8 = vweird.f32 %v505_v57  ;;  %v507_v2 = vpop.eup %506 }
  0xea   :  { %vm429_vm10 = vmor %vm427_vm9, %vm428_vm8 }
  0xeb   :  { %v424_v59 = vsub.f32 1.0, %v423_v58 }
  0xed   :  { %v425_v61 = vmul.f32 %v505_v57, %v424_v59 }
  0xef   :  { %v426_v63 = vadd.f32 %v505_v57, %v425_v61 }
  0xf1   :  { %v430_v1 = vsel %vm429_vm10, %v505_v57, %v426_v63 }
  0xf2   :  { %v435_v3 = vsel %vm432_vm11, %v434_v0, %v430_v1 }
  0xf3   :  { %v442_v4 = vmul.f32 %v507_v2, %v435_v3 }
  0xf5   :  { %444 = vst [vmem:[#allocation7] sm:$0xff] %v442_v4 }
  0xf6   :  { %455 = dma.vmem_to_hbm [thread:$0]  %s451_s7, 128, %s453_s29, [#allocation4]  }
  0xf7   :  { %608 = dma.done.wait [#allocation4], 128  }
  0xf8   :  { %609 = vsyncadd [#allocation4], 4294967168 }
  0xf9   :  { %610 = dma.done.wait [#allocation9], 128  }
  0xfa   :  { %611 = vsyncadd [#allocation9], 4294967168 }
  0xfb   :  { %475 = vsyncpa [#allocation3], 1 }
  0xfc   :  { %476 = vsyncpa [#allocation6], 1 }
  0xfd   :  { %477 = vsyncpa [#allocation4], 1 }
  0xfe   :  { %478 = vsyncpa [#allocation9], 1 }

</bundles_post_ra>
